<compile_context>
chip_gen: v7x
topology: tpu7x:2x2x1
jax: 0.10.0
libtpu: 0.0.40
codegen_flags: <defaults>
</compile_context>

<pallas_src>
import functools

import numpy as np
import jax
import jax.numpy as jnp
from jax.experimental import pallas as pl
from jax.experimental.pallas import tpu as pltpu


def _pred_metrics_kernel(pxy_ref, gxy_ref, metrics_ref, idcs_ref, *, M, T):
    px = pxy_ref[0]                      # (B, M*T) predicted x, modes flattened onto lanes
    py = pxy_ref[1]                      # (B, M*T) predicted y
    gx = gxy_ref[0]                      # (B, M*T) ground-truth x, pre-tiled over modes
    gy = gxy_ref[1]                      # (B, M*T) ground-truth y
    B, MT = px.shape

    dx = px - gx
    dy = py - gy
    err = jnp.sqrt(dx * dx + dy * dy)    # (B, M*T) L2 error, lane-dense

    # Segmented reductions over T via tiny constant selector matmuls on the (idle) MXU:
    #   sel_sum[j, m]  = 1  iff  m*T <= j < (m+1)*T   ->  errT[b, m]  = sum_t err[b, m, t]
    #   sel_last[j, m] = 1  iff  j == m*T + (T-1)     ->  lastT[b, m] = err[b, m, T-1]
    j = jax.lax.broadcasted_iota(jnp.int32, (MT, M), 0)
    m = jax.lax.broadcasted_iota(jnp.int32, (MT, M), 1)
    sel_sum = ((j >= m * T) & (j < (m + 1) * T)).astype(jnp.float32)   # (M*T, M)
    sel_last = (j == m * T + (T - 1)).astype(jnp.float32)              # (M*T, M)

    errT = jnp.dot(err, sel_sum, preferred_element_type=jnp.float32,
                   precision=jax.lax.Precision.HIGHEST)                # (B, M)
    lastT = jnp.dot(err, sel_last, preferred_element_type=jnp.float32,
                    precision=jax.lax.Precision.HIGHEST)               # (B, M)

    inv_bt = 1.0 / float(B * T)          # trace-time constants: multiply, no vdiv
    inv_b = 1.0 / float(B)

    m2 = jax.lax.broadcasted_iota(jnp.int32, (B, M), 1)
    m0 = (m2 == 0).astype(jnp.float32)   # mode-0 mask

    ade1 = jnp.sum(errT * m0) * inv_bt
    fde1 = jnp.sum(lastT * m0) * inv_b

    # argmin over modes of the final-timestep error (first occurrence on ties, matching
    # np.argmin).  NOTE: assumes finite errors; a NaN would make the one-hot all-zero.
    minv = jnp.min(lastT, axis=1, keepdims=True)             # (B, 1)
    cand = jnp.where(lastT <= minv, m2, jnp.int32(M))
    min_idcs = jnp.min(cand, axis=1, keepdims=True)          # (B, 1) int32

    onehot = (m2 == min_idcs).astype(jnp.float32)            # (B, M)
    ade = jnp.sum(errT * onehot) * inv_bt
    fde = jnp.sum(lastT * onehot) * inv_b

    # Lane-dense output stores (unmasked vst); sliced to (4,) / (B,) by the wrapper.
    lane = jax.lax.broadcasted_iota(jnp.int32, (1, 128), 1)
    metrics_ref[...] = jnp.where(
        lane == 0, ade1,
        jnp.where(lane == 1, fde1, jnp.where(lane == 2, ade, fde)))
    idcs_ref[...] = jnp.broadcast_to(min_idcs, (B, 128))


@jax.jit
def _pred_metrics_device(preds, gt_preds):
    """preds: (B, M, T, 2) f32, gt_preds: (B, T, 2) f32 -> ((4,) f32, (B,) i32)."""
    B, M, T, _ = preds.shape
    MT = M * T

    # Stack x/y on a leading axis and flatten modes onto the lane axis (lane-dense);
    # tile the ground truth over modes so the kernel sees two identically shaped blocks.
    pxy = jnp.moveaxis(preds, -1, 0).reshape(2, B, MT)            # (2, B, M*T)
    gxy = jnp.tile(jnp.moveaxis(gt_preds, -1, 0), (1, 1, M))      # (2, B, M*T)

    metrics_pad, idcs_pad = pl.pallas_call(
        functools.partial(_pred_metrics_kernel, M=M, T=T),
        out_shape=(jax.ShapeDtypeStruct((1, 128), jnp.float32),
                   jax.ShapeDtypeStruct((B, 128), jnp.int32)),
        grid=(1,),
        in_specs=[
            pl.BlockSpec((2, B, MT), lambda i: (0, 0, 0)),
            pl.BlockSpec((2, B, MT), lambda i: (0, 0, 0)),
        ],
        out_specs=(
            pl.BlockSpec((1, 128), lambda i: (0, 0)),
            pl.BlockSpec((B, 128), lambda i: (0, 0)),
        ),
        compiler_params=pltpu.CompilerParams(dimension_semantics=("arbitrary",)),
    )(pxy, gxy)
    # TODO(synk): for production-scale B (thousands of actors) add a grid over B-blocks
    # with dimension_semantics=("parallel",) + partial sums so both v7x TCs participate.
    return metrics_pad[0, :4], idcs_pad[:, 0]


def pred_metrics(preds, gt_preds, has_preds):
    """Pallas-backed equivalent of the reference numpy pred_metrics."""
    has_preds = np.asarray(has_preds)
    assert has_preds.all()
    # Accepts numpy or device arrays; no extra host round-trip for device inputs.
    preds = jnp.asarray(preds, jnp.float32)       # (B, M, T, 2)
    gt_preds = jnp.asarray(gt_preds, jnp.float32)  # (B, T, 2)

    metrics, idcs = _pred_metrics_device(preds, gt_preds)
    metrics = np.asarray(jax.block_until_ready(metrics))   # single readback per call
    min_idcs = np.asarray(idcs).astype(np.int64)
    # Python floats are required by the reference API (PostProcess.display formatting).
    return (float(metrics[0]), float(metrics[1]),
            float(metrics[2]), float(metrics[3]), min_idcs)


def _pred_metrics_ref(preds, gt_preds, has_preds):
    """Straight numpy port of the PyTorch reference (for verification)."""
    assert has_preds.all()
    preds = np.asarray(preds, np.float32)
    gt_preds = np.asarray(gt_preds, np.float32)
    err = np.sqrt(((preds - np.expand_dims(gt_preds, 1)) ** 2).sum(3))
    ade1 = err[:, 0].mean()
    fde1 = err[:, 0, -1].mean()
    min_idcs = err[:, :, -1].argmin(1)
    row_idcs = np.arange(len(min_idcs)).astype(np.int64)
    err = err[row_idcs, min_idcs]
    ade = err.mean()
    fde = err[:, -1].mean()
    return ade1, fde1, ade, fde, min_idcs


class PostProcess:
    """JAX/NumPy port of the LaneGCN PostProcess module (no learnable params)."""

    def __init__(self, config):
        self.config = config

    def forward(self, out, data):
        # Pure slicing / host-transfer glue — identical semantics to the PyTorch
        # forward (take element 0:1 of each per-sample tensor and move to host).
        post_out = dict()
        post_out["preds"] = [np.asarray(x[0:1], np.float32) for x in out["reg"]]
        post_out["gt_preds"] = [np.asarray(x[0:1], np.float32) for x in data["gt_preds"]]
        post_out["has_preds"] = [np.asarray(x[0:1]) for x in data["has_preds"]]
        return post_out

    __call__ = forward

    # TODO(synk): append()/display() are host-side metric bookkeeping / printing,
    # no device compute to port to Pallas.


if __name__ == "__main__":
    key = jax.random.PRNGKey(0)
    num_samples, num_actors, num_mods, num_preds = 2, 3, 6, 8

    k_reg, k_gt = jax.random.split(key)
    reg_keys = jax.random.split(k_reg, num_samples)
    gt_keys = jax.random.split(k_gt, num_samples)

    out = {
        "reg": [jax.random.normal(reg_keys[i], (num_actors, num_mods, num_preds, 2),
                                  dtype=jnp.float32)
                for i in range(num_samples)]
    }
    data = {
        "gt_preds": [jax.random.normal(gt_keys[i], (num_actors, num_preds, 2),
                                       dtype=jnp.float32)
                     for i in range(num_samples)],
        "has_preds": [jnp.ones((num_actors, num_preds), dtype=bool)
                      for _ in range(num_samples)],
    }

    post = PostProcess(config={})
    post_out = post(out, data)

    preds = np.concatenate(post_out["preds"], 0)        # (2, 6, 8, 2)
    gt_preds = np.concatenate(post_out["gt_preds"], 0)  # (2, 8, 2)
    has_preds = np.concatenate(post_out["has_preds"], 0)

    ade1, fde1, ade, fde, min_idcs = pred_metrics(preds, gt_preds, has_preds)

    # Verify against the reference numpy implementation.
    r_ade1, r_fde1, r_ade, r_fde, r_idcs = _pred_metrics_ref(preds, gt_preds, has_preds)
    np.testing.assert_allclose(
        np.array([ade1, fde1, ade, fde]),
        np.array([r_ade1, r_fde1, r_ade, r_fde]),
        rtol=1e-5, atol=1e-5)
    np.testing.assert_array_equal(min_idcs, r_idcs)

    print("KERNEL_OK")
</pallas_src>

<mosaic_0001>
module attributes {stable_mosaic.version = 11 : i64} {
  func.func @_pred_metrics_kernel(%arg0: i32, %arg1: memref<2x2x48xf32, #tpu.memory_space<vmem>>, %arg2: memref<2x2x48xf32, #tpu.memory_space<vmem>>, %arg3: memref<1x128xf32, #tpu.memory_space<vmem>>, %arg4: memref<2x128xi32, #tpu.memory_space<vmem>>) attributes {dimension_semantics = [#tpu.dimension_semantics<arbitrary>], iteration_bounds = array<i64: 1>, scalar_prefetch = 0 : i64, scratch_operands = 0 : i64, tpu.core_type = #tpu.core_type<tc>, window_params = [{pipeline_mode = #tpu.pipeline_mode<synchronous>, transform_indices = @transform_0, window_bounds = array<i64: 2, 2, 48>}, {pipeline_mode = #tpu.pipeline_mode<synchronous>, transform_indices = @transform_1, window_bounds = array<i64: 2, 2, 48>}, {pipeline_mode = #tpu.pipeline_mode<synchronous>, transform_indices = @transform_2, window_bounds = array<i64: 1, 128>}, {pipeline_mode = #tpu.pipeline_mode<synchronous>, transform_indices = @transform_3, window_bounds = array<i64: 2, 128>}]} {
    %c0 = arith.constant 0 : index
    %c0_0 = arith.constant 0 : index
    %c0_1 = arith.constant 0 : index
    %0 = vector.load %arg1[%c0, %c0_0, %c0_1] : memref<2x2x48xf32, #tpu.memory_space<vmem>>, vector<1x2x48xf32>
    %1 = vector.shape_cast %0 : vector<1x2x48xf32> to vector<2x48xf32>
    %c1 = arith.constant 1 : index
    %c0_2 = arith.constant 0 : index
    %c0_3 = arith.constant 0 : index
    %2 = vector.load %arg1[%c1, %c0_2, %c0_3] : memref<2x2x48xf32, #tpu.memory_space<vmem>>, vector<1x2x48xf32>
    %3 = vector.shape_cast %2 : vector<1x2x48xf32> to vector<2x48xf32>
    %c0_4 = arith.constant 0 : index
    %c0_5 = arith.constant 0 : index
    %c0_6 = arith.constant 0 : index
    %4 = vector.load %arg2[%c0_4, %c0_5, %c0_6] : memref<2x2x48xf32, #tpu.memory_space<vmem>>, vector<1x2x48xf32>
    %5 = vector.shape_cast %4 : vector<1x2x48xf32> to vector<2x48xf32>
    %c1_7 = arith.constant 1 : index
    %c0_8 = arith.constant 0 : index
    %c0_9 = arith.constant 0 : index
    %6 = vector.load %arg2[%c1_7, %c0_8, %c0_9] : memref<2x2x48xf32, #tpu.memory_space<vmem>>, vector<1x2x48xf32>
    %7 = vector.shape_cast %6 : vector<1x2x48xf32> to vector<2x48xf32>
    %8 = arith.subf %1, %5 : vector<2x48xf32>
    %9 = arith.subf %3, %7 : vector<2x48xf32>
    %10 = arith.mulf %8, %8 : vector<2x48xf32>
    %11 = arith.mulf %9, %9 : vector<2x48xf32>
    %12 = arith.addf %10, %11 : vector<2x48xf32>
    %13 = math.sqrt %12 : vector<2x48xf32>
    %14 = tpu.iota {dimensions = array<i32: 0>} : vector<48x6xi32>
    %15 = tpu.iota {dimensions = array<i32: 1>} : vector<48x6xi32>
    %c8_i32 = arith.constant 8 : i32
    %16 = vector.broadcast %c8_i32 : i32 to vector<48x6xi32>
    %17 = arith.muli %15, %16 : vector<48x6xi32>
    %18 = arith.cmpi sge, %14, %17 : vector<48x6xi32>
    %c1_i32 = arith.constant 1 : i32
    %19 = vector.broadcast %c1_i32 : i32 to vector<48x6xi32>
    %20 = arith.addi %15, %19 : vector<48x6xi32>
    %c8_i32_10 = arith.constant 8 : i32
    %21 = vector.broadcast %c8_i32_10 : i32 to vector<48x6xi32>
    %22 = arith.muli %20, %21 : vector<48x6xi32>
    %23 = arith.cmpi slt, %14, %22 : vector<48x6xi32>
    %24 = arith.andi %18, %23 : vector<48x6xi1>
    %25 = arith.extui %24 : vector<48x6xi1> to vector<48x6xi32>
    %26 = arith.sitofp %25 : vector<48x6xi32> to vector<48x6xf32>
    %c8_i32_11 = arith.constant 8 : i32
    %27 = vector.broadcast %c8_i32_11 : i32 to vector<48x6xi32>
    %28 = arith.muli %15, %27 : vector<48x6xi32>
    %c7_i32 = arith.constant 7 : i32
    %29 = vector.broadcast %c7_i32 : i32 to vector<48x6xi32>
    %30 = arith.addi %28, %29 : vector<48x6xi32>
    %31 = arith.cmpi eq, %14, %30 : vector<48x6xi32>
    %32 = arith.extui %31 : vector<48x6xi1> to vector<48x6xi32>
    %33 = arith.sitofp %32 : vector<48x6xi32> to vector<48x6xf32>
    %cst = arith.constant dense<0.000000e+00> : vector<2x6xf32>
    %34 = tpu.matmul %13, %26, %cst {dimension_numbers = #tpu.dot_dimension_numbers<[1], [0], [0], [1], [0, 0, 1, 1], [], []>, precision = #tpu.contract_precision<fp32>} : vector<2x48xf32>, vector<48x6xf32>, vector<2x6xf32> -> vector<2x6xf32>
    %cst_12 = arith.constant dense<0.000000e+00> : vector<2x6xf32>
    %35 = tpu.matmul %13, %33, %cst_12 {dimension_numbers = #tpu.dot_dimension_numbers<[1], [0], [0], [1], [0, 0, 1, 1], [], []>, precision = #tpu.contract_precision<fp32>} : vector<2x48xf32>, vector<48x6xf32>, vector<2x6xf32> -> vector<2x6xf32>
    %36 = tpu.iota {dimensions = array<i32: 1>} : vector<2x6xi32>
    %c0_i32 = arith.constant 0 : i32
    %37 = vector.broadcast %c0_i32 : i32 to vector<2x6xi32>
    %38 = arith.cmpi eq, %36, %37 : vector<2x6xi32>
    %39 = arith.extui %38 : vector<2x6xi1> to vector<2x6xi32>
    %40 = arith.sitofp %39 : vector<2x6xi32> to vector<2x6xf32>
    %41 = arith.mulf %34, %40 : vector<2x6xf32>
    %42 = vector.shape_cast %41 : vector<2x6xf32> to vector<1x2x6xf32>
    %cst_13 = arith.constant dense<0.000000e+00> : vector<1xf32>
    %43 = vector.multi_reduction <add>, %42, %cst_13 [1, 2] : vector<1x2x6xf32> to vector<1xf32>
    %44 = vector.shape_cast %43 : vector<1xf32> to vector<1x1x1xf32>
    %45 = vector.extract %44[0, 0, 0] : f32 from vector<1x1x1xf32>
    %cst_14 = arith.constant 6.250000e-02 : f32
    %46 = arith.mulf %45, %cst_14 : f32
    %47 = arith.mulf %35, %40 : vector<2x6xf32>
    %48 = vector.shape_cast %47 : vector<2x6xf32> to vector<1x2x6xf32>
    %cst_15 = arith.constant dense<0.000000e+00> : vector<1xf32>
    %49 = vector.multi_reduction <add>, %48, %cst_15 [1, 2] : vector<1x2x6xf32> to vector<1xf32>
    %50 = vector.shape_cast %49 : vector<1xf32> to vector<1x1x1xf32>
    %51 = vector.extract %50[0, 0, 0] : f32 from vector<1x1x1xf32>
    %cst_16 = arith.constant 5.000000e-01 : f32
    %52 = arith.mulf %51, %cst_16 : f32
    %cst_17 = arith.constant dense<0x7F800000> : vector<2xf32>
    %53 = vector.multi_reduction <minimumf>, %35, %cst_17 [1] : vector<2x6xf32> to vector<2xf32>
    %54 = vector.shape_cast %53 : vector<2xf32> to vector<2x1xf32>
    %55 = vector.broadcast %54 : vector<2x1xf32> to vector<2x6xf32>
    %56 = arith.cmpf ole, %35, %55 : vector<2x6xf32>
    %c6_i32 = arith.constant 6 : i32
    %57 = vector.broadcast %c6_i32 : i32 to vector<2x6xi32>
    %58 = arith.select %56, %36, %57 : vector<2x6xi1>, vector<2x6xi32>
    %cst_18 = arith.constant dense<2147483647> : vector<2xi32>
    %59 = vector.multi_reduction <minsi>, %58, %cst_18 [1] : vector<2x6xi32> to vector<2xi32>
    %60 = vector.shape_cast %59 : vector<2xi32> to vector<2x1xi32>
    %61 = vector.broadcast %60 : vector<2x1xi32> to vector<2x6xi32>
    %62 = arith.cmpi eq, %36, %61 : vector<2x6xi32>
    %63 = arith.extui %62 : vector<2x6xi1> to vector<2x6xi32>
    %64 = arith.sitofp %63 : vector<2x6xi32> to vector<2x6xf32>
    %65 = arith.mulf %34, %64 : vector<2x6xf32>
    %66 = vector.shape_cast %65 : vector<2x6xf32> to vector<1x2x6xf32>
    %cst_19 = arith.constant dense<0.000000e+00> : vector<1xf32>
    %67 = vector.multi_reduction <add>, %66, %cst_19 [1, 2] : vector<1x2x6xf32> to vector<1xf32>
    %68 = vector.shape_cast %67 : vector<1xf32> to vector<1x1x1xf32>
    %69 = vector.extract %68[0, 0, 0] : f32 from vector<1x1x1xf32>
    %cst_20 = arith.constant 6.250000e-02 : f32
    %70 = arith.mulf %69, %cst_20 : f32
    %71 = arith.mulf %35, %64 : vector<2x6xf32>
    %72 = vector.shape_cast %71 : vector<2x6xf32> to vector<1x2x6xf32>
    %cst_21 = arith.constant dense<0.000000e+00> : vector<1xf32>
    %73 = vector.multi_reduction <add>, %72, %cst_21 [1, 2] : vector<1x2x6xf32> to vector<1xf32>
    %74 = vector.shape_cast %73 : vector<1xf32> to vector<1x1x1xf32>
    %75 = vector.extract %74[0, 0, 0] : f32 from vector<1x1x1xf32>
    %cst_22 = arith.constant 5.000000e-01 : f32
    %76 = arith.mulf %75, %cst_22 : f32
    %77 = tpu.iota {dimensions = array<i32: 1>} : vector<1x128xi32>
    %c0_i32_23 = arith.constant 0 : i32
    %78 = vector.broadcast %c0_i32_23 : i32 to vector<1x128xi32>
    %79 = arith.cmpi eq, %77, %78 : vector<1x128xi32>
    %c1_i32_24 = arith.constant 1 : i32
    %80 = vector.broadcast %c1_i32_24 : i32 to vector<1x128xi32>
    %81 = arith.cmpi eq, %77, %80 : vector<1x128xi32>
    %c2_i32 = arith.constant 2 : i32
    %82 = vector.broadcast %c2_i32 : i32 to vector<1x128xi32>
    %83 = arith.cmpi eq, %77, %82 : vector<1x128xi32>
    %84 = vector.broadcast %70 : f32 to vector<1x128xf32>
    %85 = vector.broadcast %76 : f32 to vector<1x128xf32>
    %86 = arith.select %83, %84, %85 : vector<1x128xi1>, vector<1x128xf32>
    %87 = vector.broadcast %52 : f32 to vector<1x128xf32>
    %88 = arith.select %81, %87, %86 : vector<1x128xi1>, vector<1x128xf32>
    %89 = vector.broadcast %46 : f32 to vector<1x128xf32>
    %90 = arith.select %79, %89, %88 : vector<1x128xi1>, vector<1x128xf32>
    %c0_25 = arith.constant 0 : index
    %c0_26 = arith.constant 0 : index
    %91 = vector.load %arg3[%c0_25, %c0_26] : memref<1x128xf32, #tpu.memory_space<vmem>>, vector<1x128xf32>
    tpu.vector_store %arg3[%c0_25, %c0_26], %90 {strides = array<i32>} : memref<1x128xf32, #tpu.memory_space<vmem>>, vector<1x128xf32>,
    %92 = vector.shape_cast %60 : vector<2x1xi32> to vector<2x1xi32>
    %93 = vector.broadcast %92 : vector<2x1xi32> to vector<2x128xi32>
    %c0_27 = arith.constant 0 : index
    %c0_28 = arith.constant 0 : index
    %94 = vector.load %arg4[%c0_27, %c0_28] : memref<2x128xi32, #tpu.memory_space<vmem>>, vector<2x128xi32>
    tpu.vector_store %arg4[%c0_27, %c0_28], %93 {strides = array<i32>} : memref<2x128xi32, #tpu.memory_space<vmem>>, vector<2x128xi32>,
    return
  }
  func.func @transform_0(%arg0: i32) -> (i32, i32, i32) {
    %c0_i32 = arith.constant 0 : i32
    %c0_i32_0 = arith.constant 0 : i32
    %c0_i32_1 = arith.constant 0 : i32
    %c0_i32_2 = arith.constant 0 : i32
    return %c0_i32, %c0_i32_0, %c0_i32_1 : i32, i32, i32
  }
  func.func @transform_1(%arg0: i32) -> (i32, i32, i32) {
    %c0_i32 = arith.constant 0 : i32
    %c0_i32_0 = arith.constant 0 : i32
    %c0_i32_1 = arith.constant 0 : i32
    %c0_i32_2 = arith.constant 0 : i32
    return %c0_i32, %c0_i32_0, %c0_i32_1 : i32, i32, i32
  }
  func.func @transform_2(%arg0: i32) -> (i32, i32) {
    %c0_i32 = arith.constant 0 : i32
    %c0_i32_0 = arith.constant 0 : i32
    %c0_i32_1 = arith.constant 0 : i32
    return %c0_i32, %c0_i32_0 : i32, i32
  }
  func.func @transform_3(%arg0: i32) -> (i32, i32) {
    %c0_i32 = arith.constant 0 : i32
    %c0_i32_0 = arith.constant 0 : i32
    %c0_i32_1 = arith.constant 0 : i32
    return %c0_i32, %c0_i32_0 : i32, i32
  }
}

</mosaic_0001>

<bundles_post_ra>
// kernel: tile.9
= control target key start
LH: loop header
LB: loop body
LE: loop exit
PB: predicated region body
PF: predicated region fallthrough
CT: control target
= control target key end

     0   :  { %s69_s8 = smov 40   ;;  %s70_s11 = smov 24   ;;  %vm3_vm0 = vcmask 64512   ;;  %vm11_vm1 = vcmask 392512   ;;  %vm19_vm2 = vcmask 326912   ;;  %vm27_vm3 = vcmask 261312   ;;  %s108_s0 = inlined_call_operand.vmem [shape: f32[2,2,6,8], index: 0, kind: input, shape index: {}]   ;;  %s109_s1 = inlined_call_operand.vmem [shape: f32[2,2,48], index: 1, kind: output, shape index: {}]  }
   0x1   :  { %v58_v0 = vld [vmem:[%s108_s0 + $0x5] ss:$8 sm:$0xf]   ;;  %v60_v1 = vld [vmem:[%s108_s0 + $0x3] ss:$8 sm:$0xf]  }
   0x2   :  { %9 = vrot.lane.b32.xlu0 %v58_v0, %s69_s8  ;;  %25 = vrot.lane.b32.xlu1 %v60_v1, %s70_s11  ;;  %v59_v2 = vld [vmem:[%s108_s0 + $0x4] ss:$8 sm:$0xf]   ;;  %v61_v3 = vld [vmem:[%s108_s0 + $0x2] ss:$8 sm:$0xf]  }
   0x3   :  { %v2_v4 = vld [vmem:[%s108_s0] ss:$8 sm:$0xf]   ;;  %s71_s18 = smov 32   ;;  %s72_s19 = smov 16   ;;  %vm35_vm4 = vcmask 195712  }
   0x4   :  { %4 = vst.msk [vmem:[#allocation0] sm:$0x3] %vm3_vm0, %v2_v4   ;;  %6 = vst.msk [vmem:[#allocation0 + $0x6] sm:$0xc] %vm3_vm0, %v2_v4   ;;  %vm43_vm5 = vcmask 130112  }
   0x5   :  { %v62_v5 = vld [vmem:[%s108_s0 + $0x1] ss:$8 sm:$0xf]   ;;  %s73_s0 = smov 8  }
   0x6   :  { %17 = vrot.lane.b32.xlu0 %v59_v2, %s71_s18  ;;  %33 = vrot.lane.b32.xlu1 %v61_v3, %s72_s19 }
   0xa   :  { %41 = vrot.lane.b32.xlu0 %v62_v5, %s73_s0 }
  0x74   :  { %v10_v6 = vpop.permute.xlu0 %9   ;;  %v26_v7 = vpop.permute.xlu1 %25  }
  0x75   :  { %12 = vst.msk [vmem:[#allocation0] sm:$0x3] %vm11_vm1, %v10_v6   ;;  %14 = vst.msk [vmem:[#allocation0 + $0x6] sm:$0xc] %vm11_vm1, %v10_v6  }
  0x78   :  { %v18_v8 = vpop.permute.xlu0 %17   ;;  %v34_v9 = vpop.permute.xlu1 %33  }
  0x79   :  { %20 = vst.msk [vmem:[#allocation0] sm:$0x3] %vm19_vm2, %v18_v8   ;;  %22 = vst.msk [vmem:[#allocation0 + $0x6] sm:$0xc] %vm19_vm2, %v18_v8  }
  0x7a   :  { %28 = vst.msk [vmem:[#allocation0] sm:$0x3] %vm27_vm3, %v26_v7   ;;  %30 = vst.msk [vmem:[#allocation0 + $0x6] sm:$0xc] %vm27_vm3, %v26_v7  }
  0x7b   :  { %36 = vst.msk [vmem:[#allocation0] sm:$0x3] %vm35_vm4, %v34_v9   ;;  %38 = vst.msk [vmem:[#allocation0 + $0x6] sm:$0xc] %vm35_vm4, %v34_v9  }
  0x7c   :  { %v42_v10 = vpop.permute.xlu0 %41  }
  0x7d   :  { %44 = vst.msk [vmem:[#allocation0] sm:$0x3] %vm43_vm5, %v42_v10   ;;  %46 = vst.msk [vmem:[#allocation0 + $0x6] sm:$0xc] %vm43_vm5, %v42_v10  }
  0x84   :  { %v50_v11 = vld [vmem:[#allocation0] sm:$0x3]  ;;  %v54_v12 = vld [vmem:[#allocation0 + $0x8] sm:$0x3] }
  0x85   :  { %52 = vst [vmem:[%s109_s1] sm:$0x3] %v50_v11  ;;  %63 = vst [vmem:[%s109_s1 + $0x2] sm:$0x3] %v54_v12 }

// kernel: _pred_metrics_device.1
= control target key start
LH: loop header
LB: loop body
LE: loop exit
PB: predicated region body
PF: predicated region fallthrough
CT: control target
= control target key end

     0   :  { %v31_v0 = vlaneseq  ;;  %v1670_v1 = vmov 0.0|0.0   ;;  %vm1671_vm0 = vmmov 0   ;;  %v1672_v6 = vmov 0.0   ;;  %s2010_s0 = inlined_call_operand.vmem [shape: f32[2,2,48], index: 0, kind: input, shape index: {}]   ;;  %s2011_s1 = inlined_call_operand.vmem [shape: f32[2,2,48], index: 1, kind: input, shape index: {}]   ;;  %s2012_s3 = inlined_call_operand.vmem [shape: s32[2,128], index: 3, kind: output, shape index: {1}]   ;;  %s2013_s2 = inlined_call_operand.vmem [shape: f32[1,128], index: 2, kind: output, shape index: {0}]  }
   0x1   :  { %1582 = vmatprep.subr.bf16.mxu1 %v1670_v1  ;;  %v13_v2 = vld [vmem:[%s2010_s0] sm:$0x3]  ;;  %v1212_v3 = vld [vmem:[%s2010_s0 + $0x2] sm:$0x3]  ;;  %1528 = vmatprep.subr.bf16.mxu0 %v1670_v1  ;;  %v1673_v22 = vmov 1.0|1.0  }
   0x2   :  { %v1702_v4 = vshrl.u32 %v31_v0, 7  ;;  %v1704_v5 = vand.u32 127, %v31_v0  ;;  %1450 = vmatprep.mubr.msk.f32.mxu1 %vm1671_vm0, %v1672_v6  ;;  %v16_v7 = vld [vmem:[%s2011_s1] sm:$0x3]  ;;  %v1213_v8 = vld [vmem:[%s2011_s1 + $0x2] sm:$0x3]  ;;  %1360 = vmatprep.mubr.msk.f32.mxu0 %vm1671_vm0, %v1672_v6 }
   0x3   :  { %v19_v9 = vsub.f32 %v13_v2, %v16_v7  ;;  %v20_v10 = vsub.f32 %v1212_v3, %v1213_v8  ;;  %vm92_vm12 = vcmask 392192  }
   0x4   :  { %v1717_v11 = vadd.s32 8, %v1702_v4  ;;  %v1720_v12 = vmul.u32 8, %v1704_v5  ;;  %v1723_v13 = vadd.s32 16, %v1702_v4  ;;  %v1726_v14 = vadd.s32 24, %v1702_v4 }
   0x5   :  { %v21_v15 = vmul.f32 %v19_v9, %v19_v9  ;;  %v22_v16 = vmul.f32 %v20_v10, %v20_v10  ;;  %v1730_v18 = vadd.s32 32, %v1702_v4  ;;  %v1733_v19 = vadd.s32 40, %v1702_v4 }
   0x6   :  { %v73_v17 = vadd.s32 7, %v1720_v12  ;;  %v47_v21 = vadd.s32 1, %v1704_v5  ;;  %vm41_vm13 = vcmp.ge.s32.totalorder %v1702_v4, %v1720_v12  ;;  %vm42_vm14 = vcmp.ge.s32.totalorder %v1717_v11, %v1720_v12 }
   0x7   :  { %v23_v20 = vadd.f32 %v22_v16, %v21_v15 }
   0x8   :  { %vm74_vm1 = vcmp.eq.s32.totalorder %v1702_v4, %v73_v17  ;;  %vm75_vm2 = vcmp.eq.s32.totalorder %v1717_v11, %v73_v17  ;;  %vm76_vm3 = vcmp.eq.s32.totalorder %v1723_v13, %v73_v17  ;;  %vm77_vm4 = vcmp.eq.s32.totalorder %v1726_v14, %v73_v17 }
   0x9   :  { %vm1739_vm5 = vmpackc.low %vm75_vm2, %vm74_vm1  ;;  %1668 = vrsqrt.f32 %v23_v20  ;;  %vm78_vm7 = vcmp.eq.s32.totalorder %v1730_v18, %v73_v17  ;;  %vm79_vm8 = vcmp.eq.s32.totalorder %v1733_v19, %v73_v17  ;;  %v1220_v24 = vsel %vm74_vm1, 1.0, %v1672_v6 }
   0xa   :  { %1584 = vmatpush3.bf16.msk.msra.mxu1 %vm1739_vm5, %v1673_v22  ;;  %vm1751_vm6 = vmpackc.low %vm77_vm4, %vm76_vm3  ;;  %v1221_v25 = vsel %vm75_vm2, 1.0, %v1672_v6  ;;  %v1771_v27 = vsub.f32 %v1220_v24, %v1220_v24  ;;  %v1222_v28 = vsel %vm76_vm3, 1.0, %v1672_v6  ;;  %v1223_v30 = vsel %vm77_vm4, 1.0, %v1672_v6 }
   0xb   :  { %1585 = vmatprep.subr.bf16.mxu1 %v1670_v1  ;;  %vm1767_vm9 = vmpackc.low %vm79_vm8, %vm78_vm7  ;;  %v1776_v29 = vsub.f32 %v1221_v25, %v1221_v25  ;;  %v1785_v31 = vsub.f32 %v1222_v28, %v1222_v28  ;;  %v1788_v34 = vsub.f32 %v1223_v30, %v1223_v30  ;;  %vm26_vm10 = vcmp.eq.f32.partialorder %v23_v20, inf }
   0xc   :  { %v691_v33 = vand.u32 4294901760, %v1771_v27  ;;  %v29_v35 = vand.u32 2147483648, %v23_v20  ;;  %vm28_vm11 = vcmp.eq.f32.partialorder %v23_v20, 0.0  ;;  %v1224_v38 = vsel %vm78_vm7, 1.0, %v1672_v6 }
   0xd   :  { %v698_v36 = vand.u32 4294901760, %v1776_v29  ;;  %v1225_v39 = vsel %vm79_vm8, 1.0, %v1672_v6  ;;  %v705_v42 = vand.u32 4294901760, %v1785_v31  ;;  %v712_v43 = vand.u32 4294901760, %v1788_v34 }
   0xe   :  { %1587 = vmatpush3.bf16.msk.msra.mxu1 %vm1751_vm6, %v1673_v22  ;;  %v692_v41 = vsub.f32 %v1771_v27, %v691_v33  ;;  %v718_v46 = vsub.f32 %v1224_v38, %v1224_v38  ;;  %v725_v47 = vsub.f32 %v1225_v39, %v1225_v39  ;;  %v1601_v9 = vpack.c.bf16 %v1776_v29, %v1771_v27 }
   0xf   :  { %1588 = vmatprep.subr.bf16.mxu1 %v1670_v1  ;;  %v699_v45 = vsub.f32 %v1776_v29, %v698_v36  ;;  %v706_v51 = vsub.f32 %v1785_v31, %v705_v42  ;;  %v713_v52 = vsub.f32 %v1788_v34, %v712_v43  ;;  %v1604_v10 = vpack.c.bf16 %v1788_v34, %v1785_v31 }
  0x10   :  { %v693_v53 = vand.u32 4294901760, %v692_v41  ;;  %v719_v55 = vand.u32 4294901760, %v718_v46  ;;  %v726_v56 = vand.u32 4294901760, %v725_v47  ;;  %v1607_v15 = vpack.c.bf16 %v725_v47, %v718_v46 }
  0x11   :  { %v700_v54 = vand.u32 4294901760, %v699_v45  ;;  %v707_v59 = vand.u32 4294901760, %v706_v51  ;;  %v714_v61 = vand.u32 4294901760, %v713_v52  ;;  %v1619_v16 = vpack.c.bf16 %v698_v36, %v691_v33 }
  0x12   :  { %1590 = vmatpush3.bf16.msk.msra.mxu1 %vm1767_vm9, %v1673_v22  ;;  %v720_v62 = vsub.f32 %v718_v46, %v719_v55  ;;  %v727_v63 = vsub.f32 %v725_v47, %v726_v56  ;;  %v1622_v17 = vpack.c.bf16 %v712_v43, %v705_v42  ;;  %v48_v24 = vmul.u32 8, %v47_v21 }
  0x13   :  { %1591 = vmatprep.subr.bf16.mxu1 %v1670_v1  ;;  %v1669_v32 = vpop.eup %1668  ;;  %v1592_v60 = vpack.c.bf16 %v700_v54, %v693_v53  ;;  %v1595_v2 = vpack.c.bf16 %v714_v61, %v707_v59  ;;  %vm43_vm3 = vcmp.ge.s32.totalorder %v1723_v13, %v1720_v12 }
  0x14   :  { %v25_v37 = vmul.f32 %v1669_v32, %v23_v20  ;;  %v721_v3 = vand.u32 4294901760, %v720_v62  ;;  %v728_v7 = vand.u32 4294901760, %v727_v63  ;;  %vm49_vm15 = vcmp.lt.s32.totalorder %v1702_v4, %v48_v24 }
  0x15   :  { %vm50_vm1 = vcmp.lt.s32.totalorder %v1717_v11, %v48_v24  ;;  %vm55_vm2 = vmand %vm41_vm13, %vm49_vm15  ;;  %vm51_vm4 = vcmp.lt.s32.totalorder %v1723_v13, %v48_v24  ;;  %vm52_vm7 = vcmp.lt.s32.totalorder %v1726_v14, %v48_v24  ;;  %vm46_vm13 = vcmp.ge.s32.totalorder %v1733_v19, %v1720_v12 }
  0x16   :  { %v27_v40 = vsel %vm26_vm10, %v23_v20, %v25_v37  ;;  %v1598_v8 = vpack.c.bf16 %v728_v7, %v721_v3  ;;  %v1625_v20 = vpack.c.bf16 %v726_v56, %v719_v55  ;;  %v1214_v23 = vsel %vm55_vm2, 1.0, %v1672_v6 }
  0x17   :  { %v30_v44 = vsel %vm28_vm11, %v29_v35, %v27_v40  ;;  %v1890_v11 = vsub.f32 %v1214_v23, %v1214_v23  ;;  %vm45_vm10 = vcmp.ge.s32.totalorder %v1730_v18, %v1720_v12  ;;  %vm53_vm11 = vcmp.lt.s32.totalorder %v1730_v18, %v48_v24 }
  0x18   :  { %v94_v48 = vsel %vm92_vm12, %v30_v44, 0 }
  0x19   :  { %v1803_v49 = vand.u32 4294901760, %v94_v48 }
  0x1b   :  { %v1806_v50 = vsub.f32 %v94_v48, %v1803_v49 }
  0x1d   :  { %v1811_v57 = vand.u32 4294901760, %v1806_v50 }
  0x1f   :  { %v170_v58 = vsub.f32 %v1806_v50, %v1811_v57 }
  0x21   :  { %v1815_v0 = vand.u32 4294901760, %v170_v58 }
  0x23   :  { %1451 = vmatmul.mubr.f32.vlgmr.msra.gmra.mrb[0].mxu1 %v1815_v0 }
  0x24   :  { %1593 = vmatpush3.bf16.msra.mxu1 %v1592_v60  ;;  %1465 = vmatprep.mubr.msk.f32.mxu1 %vm1671_vm0, %v1672_v6 }
  0x25   :  { %1594 = vmatprep.subr.bf16.mxu1 %v1670_v1 }
  0x28   :  { %1596 = vmatpush3.bf16.msra.mxu1 %v1595_v2 }
  0x29   :  { %1597 = vmatprep.subr.bf16.mxu1 %v1670_v1 }
  0x2c   :  { %1599 = vmatpush3.bf16.msra.mxu1 %v1598_v8 }
  0x2d   :  { %1600 = vmatprep.subr.bf16.mxu1 %v1670_v1 }
  0x2f   :  { %1466 = vmatmul.mubr.f32.vlgmr.msra.gmra.mrb[0].mxu1 %v1803_v49 }
  0x30   :  { %1602 = vmatpush3.bf16.msra.mxu1 %v1601_v9  ;;  %1480 = vmatprep.mubr.msk.f32.mxu1 %vm1671_vm0, %v1672_v6 }
  0x31   :  { %1603 = vmatprep.subr.bf16.mxu1 %v1670_v1 }
  0x34   :  { %1605 = vmatpush3.bf16.msra.mxu1 %v1604_v10 }
  0x35   :  { %1606 = vmatprep.subr.bf16.mxu1 %v1670_v1 }
  0x38   :  { %1608 = vmatpush3.bf16.msra.mxu1 %v1607_v15 }
  0x39   :  { %1609 = vmatprep.subr.bf16.mxu1 %v1670_v1 }
  0x3b   :  { %1481 = vmatmul.mubr.f32.vlgmr.msra.gmra.mrb[0].mxu1 %v1806_v50 }
  0x3c   :  { %1611 = vmatpush3.bf16.msk.msra.mxu1 %vm1739_vm5, %v1673_v22  ;;  %1495 = vmatprep.mubr.msk.f32.mxu1 %vm1671_vm0, %v1672_v6 }
  0x3d   :  { %1612 = vmatprep.subr.bf16.mxu1 %v1670_v1 }
  0x40   :  { %1614 = vmatpush3.bf16.msk.msra.mxu1 %vm1751_vm6, %v1673_v22 }
  0x41   :  { %1615 = vmatprep.subr.bf16.mxu1 %v1670_v1 }
  0x44   :  { %1617 = vmatpush3.bf16.msk.msra.mxu1 %vm1767_vm9, %v1673_v22 }
  0x45   :  { %1618 = vmatprep.subr.bf16.mxu1 %v1670_v1 }
  0x47   :  { %1496 = vmatmul.mubr.f32.vlgmr.msra.gmra.mrb[0].mxu1 %v1811_v57 }
  0x48   :  { %1620 = vmatpush3.bf16.msra.mxu1 %v1619_v16  ;;  %1510 = vmatprep.mubr.msk.f32.mxu1 %vm1671_vm0, %v1672_v6 }
  0x49   :  { %1621 = vmatprep.subr.bf16.mxu1 %v1670_v1 }
  0x4c   :  { %1623 = vmatpush3.bf16.msra.mxu1 %v1622_v17 }
  0x4d   :  { %1624 = vmatprep.subr.bf16.mxu1 %v1670_v1 }
  0x50   :  { %1626 = vmatpush3.bf16.msra.mxu1 %v1625_v20 }
  0x51   :  { %1627 = vmatprep.subr.bf16.mxu1 %v1670_v1 }
  0x53   :  { %1511 = vmatmul.mubr.f32.vlgmr.msra.gmra.mrb[0].mxu1 %v1803_v49 }
  0x54   :  { %1629 = vmatpush3.bf16.msk.msra.mxu1 %vm1739_vm5, %v1673_v22  ;;  %1525 = vmatprep.mubr.msk.f32.mxu1 %vm1671_vm0, %v1672_v6  ;;  %vm56_vm5 = vmand %vm42_vm14, %vm50_vm1  ;;  %vm54_vm14 = vcmp.lt.s32.totalorder %v1733_v19, %v48_v24 }
  0x55   :  { %1630 = vmatprep.subr.bf16.mxu1 %v1670_v1  ;;  %v1215_v25 = vsel %vm56_vm5, 1.0, %v1672_v6  ;;  %vm1886_vm8 = vmpackc.low %vm56_vm5, %vm55_vm2  ;;  %vm1118_vm5 = vcmp.eq.s32.totalorder %v1704_v5, 0 }
  0x56   :  { %1530 = vmatpush3.bf16.msk.msra.mxu0 %vm1886_vm8, %v1673_v22  ;;  %v1895_v13 = vsub.f32 %v1215_v25, %v1215_v25  ;;  %vm59_vm1 = vmand %vm45_vm10, %vm53_vm11 }
  0x57   :  { %1531 = vmatprep.subr.bf16.mxu0 %v1670_v1  ;;  %vm60_vm2 = vmand %vm46_vm13, %vm54_vm14  ;;  %v1218_v32 = vsel %vm59_vm1, 1.0, %v1672_v6 }
  0x58   :  { %1632 = vmatpush3.bf16.msk.msra.mxu1 %vm1751_vm6, %v1673_v22  ;;  %vm44_vm6 = vcmp.ge.s32.totalorder %v1726_v14, %v1720_v12  ;;  %v180_v14 = vand.u32 4294901760, %v1890_v11  ;;  %v187_v27 = vand.u32 4294901760, %v1895_v13  ;;  %v1219_v35 = vsel %vm60_vm2, 1.0, %v1672_v6 }
  0x59   :  { %1633 = vmatprep.subr.bf16.mxu1 %v1670_v1  ;;  %vm58_vm12 = vmand %vm44_vm6, %vm52_vm7  ;;  %v207_v37 = vsub.f32 %v1218_v32, %v1218_v32  ;;  %v214_v39 = vsub.f32 %v1219_v35, %v1219_v35  ;;  %v1547_v55 = vpack.c.bf16 %v1895_v13, %v1890_v11 }
  0x5a   :  { %v1217_v28 = vsel %vm58_vm12, 1.0, %v1672_v6  ;;  %v181_v30 = vsub.f32 %v1890_v11, %v180_v14  ;;  %v188_v12 = vsub.f32 %v1895_v13, %v187_v27 }
  0x5b   :  { %v200_v31 = vsub.f32 %v1217_v28, %v1217_v28  ;;  %v208_v41 = vand.u32 4294901760, %v207_v37  ;;  %v215_v43 = vand.u32 4294901760, %v214_v39  ;;  %v1553_v58 = vpack.c.bf16 %v214_v39, %v207_v37 }
  0x5c   :  { %1635 = vmatpush3.bf16.msk.msra.mxu1 %vm1767_vm9, %v1673_v22  ;;  %vm57_vm9 = vmand %vm43_vm3, %vm51_vm4  ;;  %v182_v33 = vand.u32 4294901760, %v181_v30  ;;  %v189_v38 = vand.u32 4294901760, %v188_v12  ;;  %vm1122_vm4 = vcmask 41984  }
  0x5d   :  { %v1216_v26 = vsel %vm57_vm9, 1.0, %v1672_v6  ;;  %vm1908_vm15 = vmpackc.low %vm58_vm12, %vm57_vm9  ;;  %v201_v34 = vand.u32 4294901760, %v200_v31  ;;  %v209_v47 = vsub.f32 %v207_v37, %v208_v41  ;;  %v216_v48 = vsub.f32 %v214_v39, %v215_v43 }
  0x5e   :  { %v1912_v18 = vsub.f32 %v1216_v26, %v1216_v26  ;;  %1533 = vmatpush3.bf16.msk.msra.mxu0 %vm1908_vm15, %v1673_v22  ;;  %vm1925_vm3 = vmpackc.low %vm60_vm2, %vm59_vm1  ;;  %v1538_v44 = vpack.c.bf16 %v189_v38, %v182_v33  ;;  %v1571_v60 = vpack.c.bf16 %v215_v43, %v208_v41  ;;  %vm1193_vm9 = vcmp.eq.s32.totalorder %v1704_v5, 1 }
  0x5f   :  { %1526 = vmatmul.mubr.f32.vlgmr.msra.gmra.mrb[0].mxu1 %v1803_v49  ;;  %1534 = vmatprep.subr.bf16.mxu0 %v1670_v1  ;;  %v202_v42 = vsub.f32 %v200_v31, %v201_v34  ;;  %v210_v52 = vand.u32 4294901760, %v209_v47  ;;  %v217_v53 = vand.u32 4294901760, %v216_v48 }
  0x60   :  { %v194_v19 = vand.u32 4294901760, %v1912_v18  ;;  %v1550_v56 = vpack.c.bf16 %v200_v31, %v1912_v18 }
  0x61   :  { %v203_v46 = vand.u32 4294901760, %v202_v42  ;;  %v1544_v54 = vpack.c.bf16 %v217_v53, %v210_v52 }
  0x62   :  { %v195_v40 = vsub.f32 %v1912_v18, %v194_v19  ;;  %1536 = vmatpush3.bf16.msk.msra.mxu0 %vm1925_vm3, %v1673_v22  ;;  %v1568_v59 = vpack.c.bf16 %v201_v34, %v194_v19 }
  0x63   :  { %1537 = vmatprep.subr.bf16.mxu0 %v1670_v1 }
  0x64   :  { %v196_v45 = vand.u32 4294901760, %v195_v40 }
  0x65   :  { %1361 = vmatmul.mubr.f32.vlgmr.msra.gmra.mrb[0].mxu0 %v1815_v0 }
  0x66   :  { %1539 = vmatpush3.bf16.msra.mxu0 %v1538_v44  ;;  %v1541_v51 = vpack.c.bf16 %v203_v46, %v196_v45  ;;  %1375 = vmatprep.mubr.msk.f32.mxu0 %vm1671_vm0, %v1672_v6 }
  0x67   :  { %1540 = vmatprep.subr.bf16.mxu0 %v1670_v1 }
  0x6a   :  { %1542 = vmatpush3.bf16.msra.mxu0 %v1541_v51 }
  0x6b   :  { %1543 = vmatprep.subr.bf16.mxu0 %v1670_v1 }
  0x6e   :  { %1545 = vmatpush3.bf16.msra.mxu0 %v1544_v54 }
  0x6f   :  { %1546 = vmatprep.subr.bf16.mxu0 %v1670_v1 }
  0x71   :  { %1376 = vmatmul.mubr.f32.vlgmr.msra.gmra.mrb[0].mxu0 %v1803_v49 }
  0x72   :  { %1548 = vmatpush3.bf16.msra.mxu0 %v1547_v55  ;;  %1390 = vmatprep.mubr.msk.f32.mxu0 %vm1671_vm0, %v1672_v6 }
  0x73   :  { %1549 = vmatprep.subr.bf16.mxu0 %v1670_v1 }
  0x76   :  { %1551 = vmatpush3.bf16.msra.mxu0 %v1550_v56 }
  0x77   :  { %1552 = vmatprep.subr.bf16.mxu0 %v1670_v1 }
  0x7a   :  { %1554 = vmatpush3.bf16.msra.mxu0 %v1553_v58 }
  0x7b   :  { %1555 = vmatprep.subr.bf16.mxu0 %v1670_v1 }
  0x7d   :  { %1391 = vmatmul.mubr.f32.vlgmr.msra.gmra.mrb[0].mxu0 %v1806_v50  ;;  %v1565_v50 = vpack.c.bf16 %v187_v27, %v180_v14 }
  0x7e   :  { %1557 = vmatpush3.bf16.msk.msra.mxu0 %vm1886_vm8, %v1673_v22  ;;  %1405 = vmatprep.mubr.msk.f32.mxu0 %vm1671_vm0, %v1672_v6 }
  0x7f   :  { %1558 = vmatprep.subr.bf16.mxu0 %v1670_v1 }
  0x82   :  { %1560 = vmatpush3.bf16.msk.msra.mxu0 %vm1908_vm15, %v1673_v22 }
  0x83   :  { %1561 = vmatprep.subr.bf16.mxu0 %v1670_v1 }
  0x86   :  { %1563 = vmatpush3.bf16.msk.msra.mxu0 %vm1925_vm3, %v1673_v22 }
  0x87   :  { %1564 = vmatprep.subr.bf16.mxu0 %v1670_v1 }
  0x89   :  { %1406 = vmatmul.mubr.f32.vlgmr.msra.gmra.mrb[0].mxu0 %v1811_v57 }
  0x8a   :  { %1566 = vmatpush3.bf16.msra.mxu0 %v1565_v50  ;;  %1420 = vmatprep.mubr.msk.f32.mxu0 %vm1671_vm0, %v1672_v6 }
  0x8b   :  { %1567 = vmatprep.subr.bf16.mxu0 %v1670_v1 }
  0x8e   :  { %1569 = vmatpush3.bf16.msra.mxu0 %v1568_v59 }
  0x8f   :  { %1570 = vmatprep.subr.bf16.mxu0 %v1670_v1 }
  0x92   :  { %1572 = vmatpush3.bf16.msra.mxu0 %v1571_v60 }
  0x93   :  { %1573 = vmatprep.subr.bf16.mxu0 %v1670_v1 }
  0x95   :  { %1421 = vmatmul.mubr.f32.vlgmr.msra.gmra.mrb[0].mxu0 %v1803_v49 }
  0x96   :  { %1575 = vmatpush3.bf16.msk.msra.mxu0 %vm1886_vm8, %v1673_v22  ;;  %1435 = vmatprep.mubr.msk.f32.mxu0 %vm1671_vm0, %v1672_v6  ;;  %vm1194_vm8 = vcmp.eq.s32.totalorder %v1704_v5, 2 }
  0x97   :  { %1576 = vmatprep.subr.bf16.mxu0 %v1670_v1 }
  0x9a   :  { %1578 = vmatpush3.bf16.msk.msra.mxu0 %vm1908_vm15, %v1673_v22 }
  0x9b   :  { %1579 = vmatprep.subr.bf16.mxu0 %v1670_v1 }
  0x9e   :  { %1581 = vmatpush3.bf16.msk.msra.mxu0 %vm1925_vm3, %v1673_v22  ;;  %v1262_v22 = vsel %vm1118_vm5, 1.0, %v1672_v6 }
  0xa1   :  { %1436 = vmatmul.mubr.f32.vlgmr.msra.gmra.mrb[0].mxu0 %v1803_v49 }
 0x132   :  { %v1114_v57 = vpop.f32.mrb[0].mxu1 }
 0x133   :  { %v1527_v61 = vpop.f32.mrb[1].mxu1  ;;  %v1146_v62 = vsel %vm1122_vm4, %v1114_v57, inf  ;;  %v1134_v3 = vmul.f32 %v1262_v22, %v1114_v57 }
 0x134   :  { %1147 = vmin.xlane.f32.xlu0 %v1146_v62 }
 0x135   :  { %v1135_v7 = vsel %vm1122_vm4, %v1134_v3, 0.0 }
 0x174   :  { %v603_v8 = vpop.f32.mrb[0].mxu0 }
 0x175   :  { %v1437_v9 = vpop.f32.mrb[1].mxu0  ;;  %v1121_v17 = vmul.f32 %v1262_v22, %v603_v8 }
 0x177   :  { %v1123_v21 = vsel %vm1122_vm4, %v1121_v17, 0.0 }
 0x1c1   :  { %v1148_v63 = vpop.xlane.xlu0 %1147 }
 0x1c2   :  { %vm1149_vm0 = vcmp.le.f32.partialorder %v1114_v57, %v1148_v63 }
 0x1c3   :  { %v1150_v0 = vsel %vm1149_vm0, %v1704_v5, 6 }
 0x1c4   :  { %v1151_v1 = vsel %vm1122_vm4, %v1150_v0, 2147483647 }
 0x1c5   :  { %v1153_v2 = vshra.s32 %v1151_v1, 16  ;;  %v1152_v10 = vand.u32 65535, %v1151_v1 }
 0x1c7   :  { %v1155_v49 = vcvt.s32.f32 %v1153_v2  ;;  %v1154_v16 = vcvt.s32.f32 %v1152_v10 }
 0x1c9   :  { %1156 = vmin.xlane.f32.xlu0 %v1155_v49 }
 0x1cd   :  { %1136 = vadd.xlane.f32.xlu0 %v1135_v7 }
 0x256   :  { %v1157_v15 = vpop.xlane.xlu0 %1156 }
 0x257   :  { %vm1158_vm6 = vcmp.eq.f32.partialorder %v1155_v49, %v1157_v15  ;;  %v1163_v25 = vcvt.f32.s32 %v1157_v15 }
 0x258   :  { %v1159_v20 = vsel %vm1158_vm6, %v1154_v16, inf }
 0x259   :  { %1160 = vmin.xlane.f32.xlu1 %v1159_v20  ;;  %v1164_v13 = vshll.u32 %v1163_v25, 16 }
 0x25a   :  { %v1137_v24 = vpop.xlane.xlu0 %1136 }
 0x25b   :  { %v1138_v23 = vrot.slane %v1137_v24, 4 }
 0x25d   :  { %1124 = vadd.xlane.f32.xlu1 %v1123_v21  ;;  %v1139_v4 = vadd.f32 %v1138_v23, %v1137_v24 }
 0x25f   :  { %v1140_v27 = vrot.slane %v1139_v4, 2 }
 0x261   :  { %v1141_v19 = vadd.f32 %v1140_v27, %v1139_v4 }
 0x263   :  { %v1142_v36 = vrot.slane %v1141_v19, 1 }
 0x265   :  { %v1143_v39 = vadd.f32 %v1142_v36, %v1141_v19 }
 0x2e6   :  { %v1161_v11 = vpop.xlane.xlu1 %1160 }
 0x2e7   :  { %v1162_v14 = vcvt.f32.s32 %v1161_v11 }
 0x2e9   :  { %v1165_v26 = vadd.s32 %v1164_v13, %v1162_v14 }
 0x2ea   :  { %v1125_v28 = vpop.xlane.xlu1 %1124 }
 0x2eb   :  { %1203 = vst [vmem:[%s2012_s3] sm:$0x3] %v1165_v26  ;;  %v1126_v29 = vrot.slane %v1125_v28, 4  ;;  %vm1166_vm7 = vcmp.eq.s32.totalorder %v1704_v5, %v1165_v26 }
 0x2ec   :  { %v1263_v18 = vsel %vm1166_vm7, 1.0, %v1672_v6 }
 0x2ed   :  { %v1127_v30 = vadd.f32 %v1126_v29, %v1125_v28  ;;  %v1181_v31 = vmul.f32 %v1263_v18, %v1114_v57  ;;  %v1169_v12 = vmul.f32 %v1263_v18, %v603_v8 }
 0x2ef   :  { %v1128_v32 = vrot.slane %v1127_v30, 2  ;;  %v1182_v33 = vsel %vm1122_vm4, %v1181_v31, 0.0  ;;  %v1170_v34 = vsel %vm1122_vm4, %v1169_v12, 0.0 }
 0x2f0   :  { %1183 = vadd.xlane.f32.xlu0 %v1182_v33  ;;  %1171 = vadd.xlane.f32.xlu1 %v1170_v34 }
 0x2f1   :  { %v1129_v35 = vadd.f32 %v1128_v32, %v1127_v30 }
 0x2f3   :  { %v1130_v37 = vrot.slane %v1129_v35, 1 }
 0x2f5   :  { %v1131_v38 = vadd.f32 %v1130_v37, %v1129_v35 }
 0x2f7   :  { %1656 = vpush %v1131_v38 }
 0x2f8   :  { %1658 = vpush %v1143_v39 }
 0x328   :  { %s1657_s3 = spop %1656 }
 0x329   :  { %s1659_s20 = spop %1658  ;;  %s1133_s21 = smul.f32 0.0625, %s1657_s3 }
 0x32a   :  { %s1145_s22 = smul.f32 0.5, %s1659_s20 }
 0x32b   :  { %v1200_v59 = vstv %s1133_s21 }
 0x32c   :  { %v1198_v58 = vstv %s1145_s22 }
 0x37d   :  { %v1184_v40 = vpop.xlane.xlu0 %1183  ;;  %v1172_v6 = vpop.xlane.xlu1 %1171 }
 0x37e   :  { %v1185_v41 = vrot.slane %v1184_v40, 4  ;;  %v1173_v42 = vrot.slane %v1172_v6, 4 }
 0x380   :  { %v1186_v43 = vadd.f32 %v1185_v41, %v1184_v40  ;;  %v1174_v44 = vadd.f32 %v1173_v42, %v1172_v6 }
 0x382   :  { %v1187_v45 = vrot.slane %v1186_v43, 2  ;;  %v1175_v46 = vrot.slane %v1174_v44, 2 }
 0x384   :  { %v1188_v47 = vadd.f32 %v1187_v45, %v1186_v43  ;;  %v1176_v48 = vadd.f32 %v1175_v46, %v1174_v44 }
 0x386   :  { %v1177_v51 = vrot.slane %v1176_v48, 1  ;;  %v1189_v52 = vrot.slane %v1188_v47, 1 }
 0x388   :  { %v1178_v53 = vadd.f32 %v1177_v51, %v1176_v48  ;;  %v1190_v54 = vadd.f32 %v1189_v52, %v1188_v47 }
 0x38a   :  { %1660 = vpush %v1178_v53 }
 0x38b   :  { %1662 = vpush %v1190_v54 }
 0x3bb   :  { %s1661_s23 = spop %1660 }
 0x3bc   :  { %s1180_s24 = smul.f32 0.0625, %s1661_s23  ;;  %s1663_s25 = spop %1662 }
 0x3bd   :  { %s1192_s26 = smul.f32 0.5, %s1663_s25 }
 0x3be   :  { %v1195_v55 = vstv %s1180_s24 }
 0x3bf   :  { %v1196_v56 = vstv %s1192_s26 }
 0x3c0   :  { %v1197_v50 = vsel %vm1194_vm8, %v1195_v55, %v1196_v56 }
 0x3c1   :  { %v1199_v60 = vsel %vm1193_vm9, %v1198_v58, %v1197_v50 }
 0x3c2   :  { %v1201_v57 = vsel %vm1118_vm5, %v1200_v59, %v1199_v60 }
 0x3c3   :  { %1202 = vst [vmem:[%s2013_s2] sm:$0x1] %v1201_v57 }

</bundles_post_ra>
